<compile_context>
chip_gen: v6e
topology: v6e:2x2x1
jax: 0.10.0
libtpu: 0.0.40
codegen_flags: <defaults>
</compile_context>

<pallas_src>
import functools

import numpy as np
import jax
import jax.numpy as jnp
from jax.experimental import pallas as pl
from jax.experimental.pallas import tpu as pltpu


# ----------------------------------------------------------------------------
# Tiling helpers
# ----------------------------------------------------------------------------
def _round_up(x, m):
    return ((x + m - 1) // m) * m


def _tpu_generation_params():
    """(tensorcores_per_chip, per-step VMEM budget, vmem_limit cap) by device generation."""
    try:
        kind = jax.devices()[0].device_kind.lower()
    except Exception:
        kind = ""
    if "v7" in kind or "7x" in kind:
        # 2 TensorCores/chip but only 64 MiB VMEM per TC -> smaller budget, tighter cap.
        return 2, 20 * 1024 * 1024, 52 * 1024 * 1024
    if "v4" in kind or "v5p" in kind:
        # Megacore: 2 TensorCores share the chip; plenty of VMEM.
        return 2, 24 * 1024 * 1024, 96 * 1024 * 1024
    if "lite" in kind or "v5e" in kind or "v6" in kind:
        # Single TC, 128 MiB physical VMEM -> keep tiles big, never split just to get 2 steps.
        return 1, 28 * 1024 * 1024, 96 * 1024 * 1024
    return 1, 16 * 1024 * 1024, 48 * 1024 * 1024   # unknown chip: conservative defaults


def _pick_block_rows(n_rows, row_bytes, vmem_budget, n_cores):
    """Largest multiple-of-8 row tile whose footprint (double-buffered DMAs + in-kernel
    temporaries, all folded into row_bytes) fits the budget.

    On multi-TensorCore chips the tile is additionally capped so the 'parallel' grid axis gets
    >= 2 steps per core (keeps the BlockSpec pipeline overlapping DMA with compute on every
    core).  Single-TC chips (v5e/v6e) keep the tile as large as possible — tile size is the
    main lever on a memory-bound kernel.
    """
    bn = max(8, (vmem_budget // max(1, row_bytes)) // 8 * 8)
    bn = min(bn, _round_up(n_rows, 8))
    if n_cores > 1:
        min_steps = 2 * n_cores
        if n_rows >= 8 * min_steps:
            bn = min(bn, max(8, (n_rows // min_steps) // 8 * 8))
    return bn


# ----------------------------------------------------------------------------
# Fused kernel: per row-tile of nodes
#   tok_ref : (bn, T, D)  token embeddings (original dtype, unpadded trailing dims)
#   cnt_ref : (bn, 1)     int32  number of valid (prefix) tokens per node
#   inv_ref : (bn, 1)     f32    1 / max(count, 1)   (precomputed in the wrapper)
#   sim_ref : (bn, N)     f32    similarity-matrix row tile
#   x_ref   : (bn, D)     f32    node_feature = sum(valid tokens) * inv
#   ea_ref  : (bn, N-1)   f32    ea[i, k] = sim[i, k] if k < i else sim[i, k+1]
# ----------------------------------------------------------------------------
def _make_graph_kernel(T, Nm1, block_rows):
    def kernel(tok_ref, cnt_ref, inv_ref, sim_ref, x_ref, ea_ref):
        # ---- node features: masked mean over the first cnt[i] token embeddings ----
        cnt = cnt_ref[...]                                               # (bn, 1) int32
        # Small (bn, T, 1) iota; the predicate broadcasts over the lane axis inside jnp.where,
        # so no tile-sized iota / bool mask and no whole-tile dtype upcast are materialized.
        t_idx = jax.lax.broadcasted_iota(jnp.int32, (block_rows, T, 1), 1)
        valid = t_idx < cnt[:, :, None]                                  # (bn, T, 1)
        s = jnp.sum(jnp.where(valid, tok_ref[...], 0.0), axis=1, dtype=jnp.float32)
        # inv precomputed on the host/XLA side: no per-row divide or int->f32 convert here.
        # Zero-token (padding) rows have inv = 1 and sum = 0 -> zero vector (np.mean of an
        # empty slice would be NaN; only padding rows exercise this).
        x_ref[...] = (s * inv_ref[...]).astype(x_ref.dtype)

        # ---- off-diagonal pack of the sim row tile (diagonal removed via shift-by-one) ----
        base = sim_ref[:, pl.ds(0, Nm1)]                                 # sim[i, k]
        shifted = sim_ref[:, pl.ds(1, Nm1)]                              # sim[i, k+1] (in bounds)
        row = pl.program_id(0) * block_rows + jax.lax.broadcasted_iota(
            jnp.int32, (block_rows, 1), 0)                               # global node index
        col = jax.lax.broadcasted_iota(jnp.int32, (1, Nm1), 1)
        ea_ref[...] = jnp.where(col < row, base, shifted)

    return kernel


# ----------------------------------------------------------------------------
# Wrapper: tiling policy + pallas_call
# ----------------------------------------------------------------------------
def build_graph_tensors(tokens, counts, sim_mat):
    """Returns (x, edge_attr_rows):
         x[i]                = mean over the valid token embeddings of node i
         edge_attr_rows[i,k] = sim_mat[i, j] for the k-th j != i (ascending j)
    """
    N, T, D = tokens.shape
    assert sim_mat.shape == (N, N), "similarity matrix must be (N, N)"
    assert N >= 2, "need at least two nodes to build edges"
    Nm1 = N - 1
    sim_mat = sim_mat.astype(jnp.float32)

    n_cores, vmem_budget, vmem_cap = _tpu_generation_params()
    ib = tokens.dtype.itemsize
    dma_in = T * D * ib + 8 + N * 4                     # tokens + cnt/inv + sim row
    dma_out = D * 4 + Nm1 * 4                           # x row + packed edge-attr row
    temps = T * D * 4 + D * 4 + 3 * Nm1 * 4 + T * 4     # select result, accumulator, pack temps
    row_bytes = 2 * (dma_in + dma_out) + temps          # double-buffered DMA + live temporaries
    bn = _pick_block_rows(N, row_bytes, vmem_budget, n_cores)
    n_pad = _round_up(N, bn)
    vmem_limit = int(min(vmem_cap,
                         max(16 * 1024 * 1024, (3 * bn * row_bytes) // 2 + (2 << 20))))

    cnt = counts.astype(jnp.int32)[:, None]
    inv = (1.0 / jnp.maximum(counts.astype(jnp.float32), 1.0))[:, None]

    if n_pad != N:
        # Only the non-multiple-of-tile case pays a row-padding pass; with cached label
        # embeddings this would be done once, offline.
        tokens = jnp.pad(tokens, ((0, n_pad - N), (0, 0), (0, 0)))
        sim_mat = jnp.pad(sim_mat, ((0, n_pad - N), (0, 0)))
        cnt = jnp.pad(cnt, ((0, n_pad - N), (0, 0)))
        inv = jnp.pad(inv, ((0, n_pad - N), (0, 0)))

    x_pad, ea_pad = pl.pallas_call(
        _make_graph_kernel(T, Nm1, bn),
        out_shape=(
            jax.ShapeDtypeStruct((n_pad, D), jnp.float32),
            jax.ShapeDtypeStruct((n_pad, Nm1), jnp.float32),
        ),
        grid=(n_pad // bn,),
        in_specs=[
            pl.BlockSpec((bn, T, D), lambda i: (i, 0, 0)),   # trailing dims = full array dims
            pl.BlockSpec((bn, 1), lambda i: (i, 0)),
            pl.BlockSpec((bn, 1), lambda i: (i, 0)),
            pl.BlockSpec((bn, N), lambda i: (i, 0)),
        ],
        out_specs=(
            pl.BlockSpec((bn, D), lambda i: (i, 0)),
            pl.BlockSpec((bn, Nm1), lambda i: (i, 0)),
        ),
        compiler_params=pltpu.CompilerParams(
            dimension_semantics=("parallel",),
            vmem_limit_bytes=vmem_limit,
        ),
        cost_estimate=pl.CostEstimate(
            flops=n_pad * (2 * T * D + 2 * D + 2 * Nm1),
            transcendentals=0,
            bytes_accessed=n_pad * (dma_in + dma_out),
        ),
    )(tokens, cnt, inv, sim_mat)

    if n_pad != N:
        return x_pad[:N], ea_pad[:N]
    return x_pad, ea_pad


# ----------------------------------------------------------------------------
# Edge index: all directed pairs (i, j), j != i, in the _genEdge loop order, then the
# .t().contiguous() of _genGraph -> shape (2, N*(N-1)).  Vectorised + cached.
# ----------------------------------------------------------------------------
@functools.lru_cache(maxsize=None)
def build_edge_index(N):
    # torch.tensor(edges) would default to int64; int32 is used here (TPU-friendly).
    i = np.repeat(np.arange(N, dtype=np.int32), N)
    j = np.tile(np.arange(N, dtype=np.int32), N)
    keep = i != j
    return jnp.asarray(np.stack([i[keep], j[keep]], axis=0))


# ----------------------------------------------------------------------------
# Forward: returns the same fields as torch_geometric Data(x, edge_index, edge_attr)
# ----------------------------------------------------------------------------
def sematic_graph_forward(tokens, token_mask, sim_mat):
    N = sim_mat.shape[0]
    # NOTE: the in-kernel mask assumes valid tokens form a prefix (indices 0..count-1), which
    # matches how the per-label overview embeddings are packed/padded.
    counts = jnp.sum(token_mask, axis=-1).astype(jnp.int32)
    x, ea_rows = build_graph_tensors(tokens, counts, sim_mat)
    edge_attr = ea_rows.reshape(-1)        # exact _genEdge order: i major, j != i ascending
    edge_index = build_edge_index(N)
    # TODO(synk): torch_geometric.data.Data container has no Pallas/JAX equivalent; returning
    # its three tensor fields instead.
    return {"x": x, "edge_index": edge_index, "edge_attr": edge_attr}


if __name__ == "__main__":
    # Small, deterministic synthetic inputs consistent with the module:
    #   N = 8 graph nodes (labels), T = 16 tokens per node overview,
    #   D = 200 (BioWordVec_PubMed_MIMICIII_d200 embedding dim).
    N, T, D = 8, 16, 200
    key = jax.random.PRNGKey(0)
    k_tok, k_len, k_sim = jax.random.split(key, 3)

    tokens = jax.random.normal(k_tok, (N, T, D), dtype=jnp.float32)
    n_valid = jax.random.randint(k_len, (N,), 1, T + 1)          # 1..T valid tokens per node
    token_mask = (jnp.arange(T)[None, :] < n_valid[:, None]).astype(jnp.float32)
    sim_mat = jax.random.uniform(k_sim, (N, N), dtype=jnp.float32)

    fwd = jax.jit(sematic_graph_forward)
    out = fwd(tokens, token_mask, sim_mat)
    jax.block_until_ready(out)

    # Pure-JAX / numpy reference check of the numeric semantics (exact f32, no bf16 rounding).
    counts_ref = token_mask.sum(1, keepdims=True)
    feat_ref = (tokens * token_mask[:, :, None]).sum(1) / jnp.maximum(counts_ref, 1.0)
    sim_np = np.asarray(sim_mat)
    edge_attr_ref = np.asarray(
        [sim_np[i, j] for i in range(N) for j in range(N) if j != i], dtype=np.float32
    )
    edge_index_ref = np.array(
        [[i, j] for i in range(N) for j in range(N) if j != i], dtype=np.int32
    ).T

    assert out["x"].shape == (N, D)
    assert out["edge_index"].shape == (2, N * (N - 1))
    assert out["edge_attr"].shape == (N * (N - 1),)
    np.testing.assert_allclose(np.asarray(out["x"]), np.asarray(feat_ref),
                               rtol=1e-5, atol=1e-5)
    np.testing.assert_allclose(np.asarray(out["edge_attr"]), edge_attr_ref,
                               rtol=1e-6, atol=1e-6)
    np.testing.assert_array_equal(np.asarray(out["edge_index"]), edge_index_ref)

    print("KERNEL_OK")
</pallas_src>

<mosaic_0001>
module attributes {stable_mosaic.version = 11 : i64} {
  func.func @kernel(%arg0: i32, %arg1: memref<8x16x200xf32, #tpu.memory_space<vmem>>, %arg2: memref<8x1xi32, #tpu.memory_space<vmem>>, %arg3: memref<8x1xf32, #tpu.memory_space<vmem>>, %arg4: memref<8x8xf32, #tpu.memory_space<vmem>>, %arg5: memref<8x200xf32, #tpu.memory_space<vmem>>, %arg6: memref<8x7xf32, #tpu.memory_space<vmem>>) attributes {dimension_semantics = [#tpu.dimension_semantics<parallel>], iteration_bounds = array<i64: 1>, scalar_prefetch = 0 : i64, scratch_operands = 0 : i64, tpu.core_type = #tpu.core_type<tc>, window_params = [{transform_indices = @transform_0, window_bounds = array<i64: 8, 16, 200>}, {transform_indices = @transform_1, window_bounds = array<i64: 8, 1>}, {transform_indices = @transform_2, window_bounds = array<i64: 8, 1>}, {transform_indices = @transform_3, window_bounds = array<i64: 8, 8>}, {transform_indices = @transform_4, window_bounds = array<i64: 8, 200>}, {transform_indices = @transform_5, window_bounds = array<i64: 8, 7>}]} {
    %c0 = arith.constant 0 : index
    %c0_0 = arith.constant 0 : index
    %0 = vector.load %arg2[%c0, %c0_0] : memref<8x1xi32, #tpu.memory_space<vmem>>, vector<8x1xi32>
    %1 = tpu.iota {dimensions = array<i32: 1>} : vector<8x16x1xi32>
    %2 = vector.shape_cast %0 : vector<8x1xi32> to vector<8x1x1xi32>
    %3 = vector.broadcast %2 : vector<8x1x1xi32> to vector<8x16x1xi32>
    %4 = arith.cmpi slt, %1, %3 : vector<8x16x1xi32>
    %c0_1 = arith.constant 0 : index
    %c0_2 = arith.constant 0 : index
    %c0_3 = arith.constant 0 : index
    %5 = vector.load %arg1[%c0_1, %c0_2, %c0_3] : memref<8x16x200xf32, #tpu.memory_space<vmem>>, vector<8x16x200xf32>
    %cst = arith.constant 0.000000e+00 : f32
    %6 = vector.shape_cast %4 : vector<8x16x1xi1> to vector<8x16x1xi1>
    %7 = vector.broadcast %6 : vector<8x16x1xi1> to vector<8x16x200xi1>
    %8 = vector.broadcast %cst : f32 to vector<8x16x200xf32>
    %9 = arith.select %7, %5, %8 : vector<8x16x200xi1>, vector<8x16x200xf32>
    %cst_4 = arith.constant dense<0.000000e+00> : vector<8x200xf32>
    %10 = vector.multi_reduction <add>, %9, %cst_4 [1] : vector<8x16x200xf32> to vector<8x200xf32>
    %c0_5 = arith.constant 0 : index
    %c0_6 = arith.constant 0 : index
    %11 = vector.load %arg3[%c0_5, %c0_6] : memref<8x1xf32, #tpu.memory_space<vmem>>, vector<8x1xf32>
    %12 = vector.broadcast %11 : vector<8x1xf32> to vector<8x200xf32>
    %13 = arith.mulf %10, %12 : vector<8x200xf32>
    %c0_7 = arith.constant 0 : index
    %c0_8 = arith.constant 0 : index
    %14 = vector.load %arg5[%c0_7, %c0_8] : memref<8x200xf32, #tpu.memory_space<vmem>>, vector<8x200xf32>
    tpu.vector_store %arg5[%c0_7, %c0_8], %13 {strides = array<i32>} : memref<8x200xf32, #tpu.memory_space<vmem>>, vector<8x200xf32>,
    %c0_9 = arith.constant 0 : index
    %c0_10 = arith.constant 0 : index
    %15 = vector.load %arg4[%c0_9, %c0_10] : memref<8x8xf32, #tpu.memory_space<vmem>>, vector<8x7xf32>
    %c0_11 = arith.constant 0 : index
    %c1 = arith.constant 1 : index
    %16 = vector.load %arg4[%c0_11, %c1] : memref<8x8xf32, #tpu.memory_space<vmem>>, vector<8x7xf32>
    %c8_i32 = arith.constant 8 : i32
    %17 = arith.muli %arg0, %c8_i32 : i32
    %18 = tpu.iota {dimensions = array<i32: 0>} : vector<8x1xi32>
    %19 = vector.broadcast %17 : i32 to vector<8x1xi32>
    %20 = arith.addi %19, %18 : vector<8x1xi32>
    %21 = tpu.iota {dimensions = array<i32: 1>} : vector<1x7xi32>
    %22 = vector.broadcast %21 : vector<1x7xi32> to vector<8x7xi32>
    %23 = vector.broadcast %20 : vector<8x1xi32> to vector<8x7xi32>
    %24 = arith.cmpi slt, %22, %23 : vector<8x7xi32>
    %25 = arith.select %24, %15, %16 : vector<8x7xi1>, vector<8x7xf32>
    %c0_12 = arith.constant 0 : index
    %c0_13 = arith.constant 0 : index
    %26 = vector.load %arg6[%c0_12, %c0_13] : memref<8x7xf32, #tpu.memory_space<vmem>>, vector<8x7xf32>
    tpu.vector_store %arg6[%c0_12, %c0_13], %25 {strides = array<i32>} : memref<8x7xf32, #tpu.memory_space<vmem>>, vector<8x7xf32>,
    return
  }
  func.func @transform_0(%arg0: i32) -> (i32, i32, i32) {
    %c0_i32 = arith.constant 0 : i32
    %c0_i32_0 = arith.constant 0 : i32
    %c0_i32_1 = arith.constant 0 : i32
    return %arg0, %c0_i32, %c0_i32_0 : i32, i32, i32
  }
  func.func @transform_1(%arg0: i32) -> (i32, i32) {
    %c0_i32 = arith.constant 0 : i32
    %c0_i32_0 = arith.constant 0 : i32
    return %arg0, %c0_i32 : i32, i32
  }
  func.func @transform_2(%arg0: i32) -> (i32, i32) {
    %c0_i32 = arith.constant 0 : i32
    %c0_i32_0 = arith.constant 0 : i32
    return %arg0, %c0_i32 : i32, i32
  }
  func.func @transform_3(%arg0: i32) -> (i32, i32) {
    %c0_i32 = arith.constant 0 : i32
    %c0_i32_0 = arith.constant 0 : i32
    return %arg0, %c0_i32 : i32, i32
  }
  func.func @transform_4(%arg0: i32) -> (i32, i32) {
    %c0_i32 = arith.constant 0 : i32
    %c0_i32_0 = arith.constant 0 : i32
    return %arg0, %c0_i32 : i32, i32
  }
  func.func @transform_5(%arg0: i32) -> (i32, i32) {
    %c0_i32 = arith.constant 0 : i32
    %c0_i32_0 = arith.constant 0 : i32
    return %arg0, %c0_i32 : i32, i32
  }
}

</mosaic_0001>

<bundles_post_ra>
// kernel: sematic_graph_forward.1
= control target key start
LH: loop header
LB: loop body
LE: loop exit
PB: predicated region body
PF: predicated region fallthrough
CT: control target
= control target key end

     0   :  { %11 = vsyncpa [#allocation3], 0  ;;  %s768_s0 = inlined_call_operand.hbm [shape: f32[8,16,200], index: 0, kind: input, shape index: {}]   ;;  %s769_s1 = inlined_call_operand.vmem [shape: s32[8,1], index: 1, kind: input, shape index: {}]   ;;  %s770_s2 = inlined_call_operand.vmem [shape: f32[8,1], index: 2, kind: input, shape index: {}]   ;;  %s771_s3 = inlined_call_operand.vmem [shape: f32[8,8], index: 3, kind: input, shape index: {}]   ;;  %s772_s4 = inlined_call_operand.hbm [shape: f32[8,200], index: 4, kind: output, shape index: {0}]   ;;  %s773_s5 = inlined_call_operand.vmem [shape: f32[8,7], index: 5, kind: output, shape index: {1}]  }
   0x1   :  { %12 = vsyncpa [#allocation4], 0  ;;  %s586_s18 = smov [#allocation2]  }
   0x2   :  { %s18_s19 = sshll.u32 %s586_s18, 4  ;;  %s19_s19 = int_to_ptr.vmem [resolvable:$true] %s18_s19 }
   0x3   :  { %s550_s20 = scalar_lea.vmem %s19_s19, 4096  ;;  %p555_p1 = scmp.lt.s32.totalorder %s19_s19, %s19_s19 }
   0x4   :  { %p551_p0 = scmp.ne.s32.totalorder %s19_s19, %s550_s20  ;;  %p556_p2 = scmp.lt.s32.totalorder %s550_s20, %s550_s20 }
   0x6   :  { %p557_p3 = por %p556_p2, %p555_p1 }
   0x8   :  { %p558_p4 = pnand %p557_p3, %p551_p0 }
   0xa   :  { %561 = shalt.err (!%p558_p4)
}
   0xb   :  { %s587_s21 = smov 256   ;;  %s588_s22 = smov 16  }
   0xc   :  { %24 = dma.hbm_to_vmem [thread:$0]  %s768_s0, 4096, %s19_s19, [#allocation3], %s587_s21, %s587_s21, %s588_s22  }
   0xd   :  { %582 = dma.done.wait [#allocation3], 4096  }
   0xe   :  { %583 = vsyncadd [#allocation3], 4294963200  ;;  %v35_v0 = vlaneseq  ;;  %v589_v1 = vmov 0   ;;  %v590_v2 = vmov 1966171168   ;;  %v34_v7 = vld [vmem:[%s769_s1] sm:$0xff] }
   0xf   :  { %540 = vset.pattern.permute.xlu1 %v589_v1  ;;  %539 = vset.pattern.permute.xlu0 %v589_v1  ;;  %v40_v3 = vunpack.c.l.s4 %v590_v2  ;;  %v38_v10 = vcombine.high %v34_v7, %v34_v7  ;;  %v408_v47 = vld [vmem:[%s770_s2] sm:$0xff]  ;;  %s591_s29 = smov 127   ;;  %v137_v50 = vld [vmem:[#allocation2 + $0x10] sm:$0xff]  ;;  %v138_v51 = vld [vmem:[#allocation2 + $0x18] sm:$0xff] }
  0x10   :  { %v629_v4 = vshrl.u32 %v35_v0, 7  ;;  %v677_v48 = vld [vmem:[%s771_s3] sm:$0xff]  ;;  %v681_v49 = vand.u32 127, %v35_v0  ;;  %v136_v53 = vld [vmem:[#allocation2 + $0x8] sm:$0xff] }
  0x11   :  { %v41_v5 = vunpack.c.0.s8 %v40_v3  ;;  %v135_v52 = vld [vmem:[#allocation2] sm:$0xff]  ;;  %v144_v63 = vld [vmem:[#allocation2 + $0x48] sm:$0xff] }
  0x12   :  { %v89_v9 = vsub.s32 0, %v629_v4  ;;  %v637_v11 = vadd.s32 8, %v629_v4  ;;  %v140_v2 = vld [vmem:[#allocation2 + $0x28] sm:$0xff] }
  0x13   :  { %v44_v6 = vsub.s32 %v41_v5, %v629_v4 }
  0x15   :  { %v45_v8 = vrot.slane %v34_v7, %v44_v6  ;;  %v52_v14 = vrot.slane %v38_v10, %v44_v6  ;;  %v139_v7 = vld [vmem:[#allocation2 + $0x20] sm:$0xff] }
  0x17   :  { %v61_v12 = vrot.slane %v45_v8, %v44_v6  ;;  %v53_v13 = vcombine.high %v45_v8, %v45_v8  ;;  %v68_v18 = vrot.slane %v52_v14, %v44_v6  ;;  %v54_v25 = vcombine.high %v52_v14, %v52_v14  ;;  %v141_v14 = vld [vmem:[#allocation2 + $0x30] sm:$0xff] }
  0x19   :  { %v90_v15 = vrot.slane %v61_v12, %v89_v9  ;;  %v83_v16 = vcombine.high %v61_v12, %v61_v12  ;;  %v75_v17 = vrot.slane %v53_v13, %v44_v6  ;;  %v106_v26 = vrot.slane %v68_v18, %v89_v9  ;;  %v145_v12 = vld [vmem:[#allocation2 + $0x50] sm:$0xff]  ;;  %v146_v13 = vld [vmem:[#allocation2 + $0x58] sm:$0xff] }
  0x1a   :  { %v82_v31 = vrot.slane %v54_v25, %v44_v6  ;;  %v84_v35 = vcombine.high %v68_v18, %v68_v18  ;;  %v143_v6 = vld [vmem:[#allocation2 + $0x40] sm:$0xff] }
  0x1b   :  { %vm120_vm0 = vcmp.lt.s32.totalorder %v637_v11, %v90_v15  ;;  %vm119_vm1 = vcmp.lt.s32.totalorder %v629_v4, %v90_v15  ;;  %v98_v19 = vrot.slane %v83_v16, %v89_v9  ;;  %v94_v20 = vrot.slane %v75_v17, %v89_v9 }
  0x1c   :  { %v168_v21 = vsel %vm120_vm0, 1, %v589_v1  ;;  %v167_v22 = vsel %vm119_vm1, 1, %v589_v1  ;;  %v85_v27 = vcombine.high %v75_v17, %v75_v17  ;;  %vm128_vm6 = vcmp.lt.s32.totalorder %v637_v11, %v106_v26 }
  0x1d   :  { %187 = vperm.xlu1 %540, %v168_v21   ;;  %184 = vperm.xlu0 %539, %v167_v22   ;;  %vm123_vm2 = vcmp.lt.s32.totalorder %v629_v4, %v98_v19  ;;  %vm121_vm3 = vcmp.lt.s32.totalorder %v629_v4, %v94_v20  ;;  %vm124_vm4 = vcmp.lt.s32.totalorder %v637_v11, %v98_v19  ;;  %v176_v32 = vsel %vm128_vm6, 1, %v589_v1 }
  0x1e   :  { %v171_v23 = vsel %vm123_vm2, 1, %v589_v1  ;;  %v169_v24 = vsel %vm121_vm3, 1, %v589_v1  ;;  %vm122_vm5 = vcmp.lt.s32.totalorder %v637_v11, %v94_v20  ;;  %v172_v28 = vsel %vm124_vm4, 1, %v589_v1  ;;  %v142_v20 = vld [vmem:[#allocation2 + $0x38] sm:$0xff] }
  0x1f   :  { %v170_v29 = vsel %vm122_vm5, 1, %v589_v1  ;;  %vm127_vm7 = vcmp.lt.s32.totalorder %v629_v4, %v106_v26  ;;  %v102_v30 = vrot.slane %v85_v27, %v89_v9  ;;  %v110_v34 = vrot.slane %v82_v31, %v89_v9 }
  0x20   :  { %v175_v33 = vsel %vm127_vm7, 1, %v589_v1  ;;  %v114_v38 = vrot.slane %v84_v35, %v89_v9  ;;  %v86_v39 = vcombine.high %v82_v31, %v82_v31  ;;  %vm505_vm0 = vcmp.lt.s32.totalorder %v681_v49, %v629_v4 }
  0x21   :  { %196 = vperm.xlu1 %540, %v171_v23   ;;  %190 = vperm.xlu0 %539, %v169_v24   ;;  %vm126_vm8 = vcmp.lt.s32.totalorder %v637_v11, %v102_v30  ;;  %vm125_vm9 = vcmp.lt.s32.totalorder %v629_v4, %v102_v30  ;;  %vm130_vm10 = vcmp.lt.s32.totalorder %v637_v11, %v110_v34  ;;  %vm286_vm1 = vcmask 588800  }
  0x22   :  { %v174_v36 = vsel %vm126_vm8, 1, %v589_v1  ;;  %v173_v37 = vsel %vm125_vm9, 1, %v589_v1  ;;  %vm129_vm11 = vcmp.lt.s32.totalorder %v629_v4, %v110_v34  ;;  %v178_v40 = vsel %vm130_vm10, 1, %v589_v1 }
  0x23   :  { %v177_v41 = vsel %vm129_vm11, 1, %v589_v1  ;;  %vm132_vm12 = vcmp.lt.s32.totalorder %v637_v11, %v114_v38  ;;  %vm131_vm13 = vcmp.lt.s32.totalorder %v629_v4, %v114_v38  ;;  %v118_v42 = vrot.slane %v86_v39, %v89_v9 }
  0x24   :  { %v180_v43 = vsel %vm132_vm12, 1, %v589_v1  ;;  %v179_v44 = vsel %vm131_vm13, 1, %v589_v1 }
  0x25   :  { %199 = vperm.xlu1 %540, %v172_v28   ;;  %193 = vperm.xlu0 %539, %v170_v29   ;;  %vm134_vm14 = vcmp.lt.s32.totalorder %v637_v11, %v118_v42  ;;  %vm133_vm15 = vcmp.lt.s32.totalorder %v629_v4, %v118_v42 }
  0x26   :  { %v182_v45 = vsel %vm134_vm14, 1, %v589_v1  ;;  %v181_v46 = vsel %vm133_vm15, 1, %v589_v1 }
  0x29   :  { %211 = vperm.xlu1 %540, %v176_v32   ;;  %208 = vperm.xlu0 %539, %v175_v33  }
  0x2d   :  { %205 = vperm.xlu1 %540, %v174_v36   ;;  %202 = vperm.xlu0 %539, %v173_v37   ;;  %v153_v36 = vld [vmem:[#allocation2 + $0x90] sm:$0xff]  ;;  %v154_v37 = vld [vmem:[#allocation2 + $0x98] sm:$0xff] }
  0x31   :  { %217 = vperm.xlu1 %540, %v178_v40   ;;  %214 = vperm.xlu0 %539, %v177_v41  }
  0x35   :  { %223 = vperm.xlu1 %540, %v180_v43   ;;  %220 = vperm.xlu0 %539, %v179_v44  }
  0x39   :  { %229 = vperm.xlu1 %540, %v182_v45   ;;  %226 = vperm.xlu0 %539, %v181_v46  }
  0x3d   :  { %411 = vperm.xlu0 %539, %v408_v47   ;;  %507 = vrot.lane.b32.xlu1 %v677_v48, %s591_s29 }
  0x98   :  { %v188_v54 = vpop.permute.xlu1 %187  ;;  %v185_v55 = vpop.permute.xlu0 %184 }
  0x99   :  { %vm232_vm2 = vcmp.eq.s32.totalorder %v188_v54, 1  ;;  %vm231_vm3 = vcmp.eq.s32.totalorder %v185_v55, 1 }
  0x9a   :  { %v249_v56 = vsel %vm232_vm2, %v137_v50, 0.0  ;;  %v250_v57 = vsel %vm232_vm2, %v138_v51, 0.0  ;;  %v247_v58 = vsel %vm231_vm3, %v135_v52, 0.0  ;;  %v248_v59 = vsel %vm231_vm3, %v136_v53, 0.0  ;;  %v151_v52 = vld [vmem:[#allocation2 + $0x80] sm:$0xff]  ;;  %v152_v53 = vld [vmem:[#allocation2 + $0x88] sm:$0xff] }
  0x9b   :  { %v288_v60 = vsel %vm286_vm1, %v250_v57, 0.0  ;;  %v279_v61 = vadd.f32 %v249_v56, %v247_v58  ;;  %v287_v62 = vsel %vm286_vm1, %v248_v59, 0.0 }
  0x9c   :  { %v289_v0 = vadd.f32 %v288_v60, %v287_v62  ;;  %v197_v1 = vpop.permute.xlu1 %196  ;;  %v191_v3 = vpop.permute.xlu0 %190 }
  0x9d   :  { %v280_v5 = vrot.slane %v279_v61, 4  ;;  %vm235_vm4 = vcmp.eq.s32.totalorder %v197_v1, 1  ;;  %vm233_vm5 = vcmp.eq.s32.totalorder %v191_v3, 1 }
  0x9e   :  { %v290_v8 = vrot.slane %v289_v0, 4  ;;  %v256_v9 = vsel %vm235_vm4, %v144_v63, 0.0  ;;  %v252_v11 = vsel %vm233_vm5, %v140_v2, 0.0  ;;  %v255_v16 = vsel %vm235_vm4, %v143_v6, 0.0  ;;  %v150_v2 = vld [vmem:[#allocation2 + $0x78] sm:$0xff] }
  0x9f   :  { %v281_v10 = vadd.f32 %v280_v5, %v279_v61  ;;  %v319_v17 = vsel %vm286_vm1, %v256_v9, 0.0  ;;  %v251_v18 = vsel %vm233_vm5, %v139_v7, 0.0  ;;  %v303_v23 = vsel %vm286_vm1, %v252_v11, 0.0 }
  0xa0   :  { %v291_v15 = vadd.f32 %v290_v8, %v289_v0  ;;  %v200_v19 = vpop.permute.xlu1 %199  ;;  %v194_v21 = vpop.permute.xlu0 %193  ;;  %v149_v8 = vld [vmem:[#allocation2 + $0x70] sm:$0xff]  ;;  %vm511_vm4 = vcmask 56320   ;;  %vm461_vm5 = vcmask 1041409  }
  0xa1   :  { %v282_v22 = vrot.slane %v281_v10, 2  ;;  %vm236_vm6 = vcmp.eq.s32.totalorder %v200_v19, 1  ;;  %vm234_vm7 = vcmp.eq.s32.totalorder %v194_v21, 1  ;;  %v147_v19 = vld [vmem:[#allocation2 + $0x60] sm:$0xff] }
  0xa2   :  { %v292_v24 = vrot.slane %v291_v15, 2  ;;  %v257_v25 = vsel %vm236_vm6, %v145_v12, 0.0  ;;  %v258_v26 = vsel %vm236_vm6, %v146_v13, 0.0  ;;  %v253_v27 = vsel %vm234_vm7, %v141_v14, 0.0 }
  0xa3   :  { %v283_v28 = vadd.f32 %v282_v22, %v281_v10  ;;  %v312_v29 = vadd.f32 %v257_v25, %v255_v16  ;;  %v320_v30 = vsel %vm286_vm1, %v258_v26, 0.0  ;;  %v254_v31 = vsel %vm234_vm7, %v142_v20, 0.0 }
  0xa4   :  { %v293_v32 = vadd.f32 %v292_v24, %v291_v15  ;;  %v321_v33 = vadd.f32 %v320_v30, %v319_v17  ;;  %v296_v34 = vadd.f32 %v253_v27, %v251_v18  ;;  %v304_v35 = vsel %vm286_vm1, %v254_v31, 0.0  ;;  %v212_v38 = vpop.permute.xlu1 %211  ;;  %v209_v39 = vpop.permute.xlu0 %208  ;;  %v148_v24 = vld [vmem:[#allocation2 + $0x68] sm:$0xff] }
  0xa5   :  { %v284_v40 = vrot.slane %v283_v28, 1  ;;  %v313_v41 = vrot.slane %v312_v29, 4  ;;  %v305_v42 = vadd.f32 %v304_v35, %v303_v23  ;;  %vm240_vm8 = vcmp.eq.s32.totalorder %v212_v38, 1  ;;  %v155_v38 = vld [vmem:[#allocation2 + $0xa0] sm:$0xff] }
  0xa6   :  { %v294_v43 = vrot.slane %v293_v32, 1  ;;  %v322_v44 = vrot.slane %v321_v33, 4  ;;  %v297_v45 = vrot.slane %v296_v34, 4  ;;  %v265_v50 = vsel %vm240_vm8, %v153_v36, 0.0 }
  0xa7   :  { %v314_v46 = vadd.f32 %v313_v41, %v312_v29  ;;  %v306_v47 = vrot.slane %v305_v42, 4  ;;  %v266_v51 = vsel %vm240_vm8, %v154_v37, 0.0  ;;  %v691_v54 = vadd.f32 %v284_v40, %v283_v28  ;;  %v158_v37 = vld [vmem:[#allocation2 + $0xb8] sm:$0xff] }
  0xa8   :  { %v323_v55 = vadd.f32 %v322_v44, %v321_v33  ;;  %v298_v56 = vadd.f32 %v297_v45, %v296_v34  ;;  %v352_v57 = vsel %vm286_vm1, %v266_v51, 0.0  ;;  %v206_v58 = vpop.permute.xlu1 %205  ;;  %v203_v59 = vpop.permute.xlu0 %202  ;;  %vm239_vm9 = vcmp.eq.s32.totalorder %v209_v39, 1  ;;  %v156_v39 = vld [vmem:[#allocation2 + $0xa8] sm:$0xff] }
  0xa9   :  { %v315_v60 = vrot.slane %v314_v46, 2  ;;  %v307_v61 = vadd.f32 %v306_v47, %v305_v42  ;;  %vm238_vm10 = vcmp.eq.s32.totalorder %v206_v58, 1  ;;  %v263_v0 = vsel %vm239_vm9, %v151_v52, 0.0 }
  0xaa   :  { %v324_v62 = vrot.slane %v323_v55, 2  ;;  %v299_v63 = vrot.slane %v298_v56, 2  ;;  %v264_v1 = vsel %vm239_vm9, %v152_v53, 0.0  ;;  %v344_v6 = vadd.f32 %v265_v50, %v263_v0 }
  0xab   :  { %v316_v3 = vadd.f32 %v315_v60, %v314_v46  ;;  %v308_v5 = vrot.slane %v307_v61, 2  ;;  %v351_v7 = vsel %vm286_vm1, %v264_v1, 0.0  ;;  %v695_v9 = vadd.f32 %v294_v43, %v293_v32  ;;  %v157_v32 = vld [vmem:[#allocation2 + $0xb0] sm:$0xff] }
  0xac   :  { %v325_v10 = vadd.f32 %v324_v62, %v323_v55  ;;  %v300_v11 = vadd.f32 %v299_v63, %v298_v56  ;;  %v353_v12 = vadd.f32 %v352_v57, %v351_v7  ;;  %v218_v13 = vpop.permute.xlu1 %217  ;;  %v215_v14 = vpop.permute.xlu0 %214  ;;  %v345_v17 = vrot.slane %v344_v6, 4  ;;  %v161_v63 = vld [vmem:[#allocation2 + $0xd0] sm:$0xff] }
  0xad   :  { %v317_v15 = vrot.slane %v316_v3, 1  ;;  %v309_v16 = vadd.f32 %v308_v5, %v307_v61  ;;  %v262_v18 = vsel %vm238_vm10, %v150_v2, 0.0  ;;  %v261_v23 = vsel %vm238_vm10, %v149_v8, 0.0 }
  0xae   :  { %v326_v20 = vrot.slane %v325_v10, 1  ;;  %v301_v21 = vrot.slane %v300_v11, 1  ;;  %v354_v22 = vrot.slane %v353_v12, 4  ;;  %v346_v26 = vadd.f32 %v345_v17, %v344_v6 }
  0xaf   :  { %v699_v25 = vadd.f32 %v317_v15, %v316_v3  ;;  %v336_v27 = vsel %vm286_vm1, %v262_v18, 0.0  ;;  %vm237_vm11 = vcmp.eq.s32.totalorder %v203_v59, 1  ;;  %v310_v29 = vrot.slane %v309_v16, 1  ;;  %v162_v59 = vld [vmem:[#allocation2 + $0xd8] sm:$0xff]  ;;  %v160_v18 = vld [vmem:[#allocation2 + $0xc8] sm:$0xff] }
  0xb0   :  { %v702_v28 = vadd.f32 %v326_v20, %v325_v10  ;;  %v355_v30 = vadd.f32 %v354_v22, %v353_v12  ;;  %v259_v31 = vsel %vm237_vm11, %v147_v19, 0.0  ;;  %v704_v33 = vadd.f32 %v301_v21, %v300_v11  ;;  %v224_v40 = vpop.permute.xlu1 %223  ;;  %v221_v43 = vpop.permute.xlu0 %220  ;;  %v159_v11 = vld [vmem:[#allocation2 + $0xc0] sm:$0xff]  ;;  %v165_v20 = vld [vmem:[#allocation2 + $0xf0] sm:$0xff] }
  0xb1   :  { %v347_v34 = vrot.slane %v346_v26, 2  ;;  %v260_v35 = vsel %vm237_vm11, %v148_v24, 0.0  ;;  %v328_v36 = vadd.f32 %v261_v23, %v259_v31  ;;  %vm242_vm12 = vcmp.eq.s32.totalorder %v218_v13, 1  ;;  %v163_v31 = vld [vmem:[#allocation2 + $0xe0] sm:$0xff] }
  0xb2   :  { %v356_v41 = vrot.slane %v355_v30, 2  ;;  %v335_v42 = vsel %vm286_vm1, %v260_v35, 0.0  ;;  %vm241_vm13 = vcmp.eq.s32.totalorder %v215_v14, 1  ;;  %v269_v47 = vsel %vm242_vm12, %v157_v32, 0.0 }
  0xb3   :  { %v348_v44 = vadd.f32 %v347_v34, %v346_v26  ;;  %v329_v45 = vrot.slane %v328_v36, 4  ;;  %v337_v46 = vadd.f32 %v336_v27, %v335_v42  ;;  %v270_v51 = vsel %vm242_vm12, %v158_v37, 0.0  ;;  %v166_v26 = vld [vmem:[#allocation2 + $0xf8] sm:$0xff]  ;;  %v164_v37 = vld [vmem:[#allocation2 + $0xe8] sm:$0xff] }
  0xb4   :  { %v357_v50 = vadd.f32 %v356_v41, %v355_v30  ;;  %v267_v52 = vsel %vm241_vm13, %v155_v38, 0.0  ;;  %v268_v53 = vsel %vm241_vm13, %v156_v39, 0.0  ;;  %v368_v58 = vsel %vm286_vm1, %v270_v51, 0.0  ;;  %v230_v5 = vpop.permute.xlu1 %229  ;;  %v227_v12 = vpop.permute.xlu0 %226 }
  0xb5   :  { %v349_v55 = vrot.slane %v348_v44, 1  ;;  %v330_v56 = vadd.f32 %v329_v45, %v328_v36  ;;  %v338_v57 = vrot.slane %v337_v46, 4  ;;  %v360_v61 = vadd.f32 %v269_v47, %v267_v52 }
  0xb6   :  { %v358_v60 = vrot.slane %v357_v50, 1  ;;  %v367_v62 = vsel %vm286_vm1, %v268_v53, 0.0  ;;  %vm244_vm14 = vcmp.eq.s32.totalorder %v224_v40, 1  ;;  %v709_v0 = vadd.f32 %v310_v29, %v309_v16 }
  0xb7   :  { %v331_v1 = vrot.slane %v330_v56, 2  ;;  %v339_v2 = vadd.f32 %v338_v57, %v337_v46  ;;  %v369_v3 = vadd.f32 %v368_v58, %v367_v62  ;;  %v711_v6 = vadd.f32 %v349_v55, %v348_v44 }
  0xb8   :  { %v713_v7 = vadd.f32 %v358_v60, %v357_v50  ;;  %v361_v8 = vrot.slane %v360_v61, 4  ;;  %v274_v10 = vsel %vm244_vm14, %v162_v59, 0.0  ;;  %v273_v17 = vsel %vm244_vm14, %v161_v63, 0.0  ;;  %v719_v42 = vpop.permute.xlu0 %411 }
  0xb9   :  { %v332_v13 = vadd.f32 %v331_v1, %v330_v56  ;;  %v340_v14 = vrot.slane %v339_v2, 2  ;;  %v370_v15 = vrot.slane %v369_v3, 4  ;;  %v384_v16 = vsel %vm286_vm1, %v274_v10, 0.0 }
  0xba   :  { %v362_v19 = vadd.f32 %v361_v8, %v360_v61  ;;  %vm243_vm15 = vcmp.eq.s32.totalorder %v221_v43, 1  ;;  %vm246_vm2 = vcmp.eq.s32.totalorder %v230_v5, 1  ;;  %vm245_vm3 = vcmp.eq.s32.totalorder %v227_v12, 1 }
  0xbb   :  { %v333_v21 = vrot.slane %v332_v13, 1  ;;  %v341_v22 = vadd.f32 %v340_v14, %v339_v2  ;;  %v371_v23 = vadd.f32 %v370_v15, %v369_v3  ;;  %v271_v24 = vsel %vm243_vm15, %v159_v11, 0.0  ;;  %v508_v11 = vpop.permute.xlu1 %507 }
  0xbc   :  { %v363_v27 = vrot.slane %v362_v19, 2  ;;  %v272_v29 = vsel %vm243_vm15, %v160_v18, 0.0  ;;  %v376_v30 = vadd.f32 %v273_v17, %v271_v24  ;;  %v277_v36 = vsel %vm246_vm2, %v165_v20, 0.0 }
  0xbd   :  { %v342_v32 = vrot.slane %v341_v22, 1  ;;  %v372_v34 = vrot.slane %v371_v23, 2  ;;  %v383_v35 = vsel %vm286_vm1, %v272_v29, 0.0  ;;  %v278_v41 = vsel %vm246_vm2, %v166_v26, 0.0 }
  0xbe   :  { %v364_v38 = vadd.f32 %v363_v27, %v362_v19  ;;  %v377_v39 = vrot.slane %v376_v30, 4  ;;  %v385_v40 = vadd.f32 %v384_v16, %v383_v35  ;;  %v334_v43 = vadd.f32 %v333_v21, %v332_v13 }
  0xbf   :  { %v373_v44 = vadd.f32 %v372_v34, %v371_v23  ;;  %v400_v45 = vsel %vm286_vm1, %v278_v41, 0.0  ;;  %v275_v46 = vsel %vm245_vm3, %v163_v31, 0.0  ;;  %v276_v52 = vsel %vm245_vm3, %v164_v37, 0.0 }
  0xc0   :  { %v365_v47 = vrot.slane %v364_v38, 1  ;;  %v378_v50 = vadd.f32 %v377_v39, %v376_v30  ;;  %v386_v51 = vrot.slane %v385_v40, 4  ;;  %v392_v55 = vadd.f32 %v277_v36, %v275_v46 }
  0xc1   :  { %v374_v53 = vrot.slane %v373_v44, 1  ;;  %v399_v56 = vsel %vm286_vm1, %v276_v52, 0.0  ;;  %v413_v57 = vrot.slane %v719_v42, 1  ;;  %v343_v58 = vadd.f32 %v342_v32, %v341_v22 }
  0xc2   :  { %v379_v59 = vrot.slane %v378_v50, 2  ;;  %v387_v60 = vadd.f32 %v386_v51, %v385_v40  ;;  %v401_v61 = vadd.f32 %v400_v45, %v399_v56  ;;  %v366_v62 = vadd.f32 %v365_v47, %v364_v38 }
  0xc3   :  { %v375_v63 = vadd.f32 %v374_v53, %v373_v44  ;;  %v393_v1 = vrot.slane %v392_v55, 4  ;;  %v414_v2 = vrot.slane %v719_v42, 2  ;;  %v415_v10 = vrot.slane %v719_v42, 3 }
  0xc4   :  { %v380_v3 = vadd.f32 %v379_v59, %v378_v50  ;;  %v388_v5 = vrot.slane %v387_v60, 2  ;;  %v402_v8 = vrot.slane %v401_v61, 4  ;;  %vm464_vm6 = vcmask 1042434  }
  0xc5   :  { %v394_v12 = vadd.f32 %v393_v1, %v392_v55  ;;  %v428_v13 = vmul.f32 %v719_v42, %v691_v54  ;;  %v430_v14 = vmul.f32 %v413_v57, %v704_v33  ;;  %v431_v15 = vmul.f32 %v413_v57, %v709_v0 }
  0xc6   :  { %vm467_vm7 = vcmask 1043459   ;;  %v381_v17 = vrot.slane %v380_v3, 1  ;;  %v389_v18 = vadd.f32 %v388_v5, %v387_v60  ;;  %v403_v19 = vadd.f32 %v402_v8, %v401_v61 }
  0xc7   :  { %v429_v16 = vmul.f32 %v719_v42, %v695_v9  ;;  %vm470_vm8 = vcmask 1044484   ;;  %v395_v20 = vrot.slane %v394_v12, 2  ;;  %v433_v21 = vmul.f32 %v414_v2, %v702_v28 }
  0xc8   :  { %v460_v22 = vrot.slane %v430_v14, 7  ;;  %v510_v54 = vsel %vm505_vm0, %v677_v48, %v508_v11  ;;  %vm473_vm9 = vcmask 1045509   ;;  %v382_v33 = vadd.f32 %v381_v17, %v380_v3 }
  0xc9   :  { %v390_v0 = vrot.slane %v389_v18, 1  ;;  %v404_v23 = vrot.slane %v403_v19, 2  ;;  %512 = vst.msk [vmem:[%s773_s5] sm:$0xff] %vm511_vm4, %v510_v54  ;;  %v416_v9 = vrot.slane %v719_v42, 4  ;;  %vm476_vm10 = vcmask 1046534   ;;  %s592_s5 = smov [#allocation5]  }
  0xca   :  { %v396_v24 = vadd.f32 %v395_v20, %v394_v12  ;;  %v481_v28 = vrot.slane %v431_v15, 7  ;;  %v417_v26 = vrot.slane %v719_v42, 5  ;;  %v418_v27 = vrot.slane %v719_v42, 6  ;;  %s519_s30 = sshll.u32 %s592_s5, 4  ;;  %s520_s30 = int_to_ptr.vmem [resolvable:$true] %s519_s30 }
  0xcb   :  { %vm479_vm11 = vcmask 1047559   ;;  %v391_v4 = vadd.f32 %v390_v0, %v389_v18  ;;  %v405_v48 = vadd.f32 %v404_v23, %v403_v19  ;;  %v432_v49 = vmul.f32 %v414_v2, %v699_v25  ;;  %s562_s6 = scalar_lea.vmem %s520_s30, 256  ;;  %p567_p6 = scmp.lt.s32.totalorder %s520_s30, %s520_s30 }
  0xcc   :  { %v434_v29 = vmul.f32 %v415_v10, %v334_v43  ;;  %v397_v30 = vrot.slane %v396_v24, 1  ;;  %v419_v31 = vrot.slane %v719_v42, 7  ;;  %v435_v32 = vmul.f32 %v415_v10, %v343_v58  ;;  %p563_p5 = scmp.ne.s32.totalorder %s520_s30, %s562_s6  ;;  %p568_p7 = scmp.lt.s32.totalorder %s562_s6, %s562_s6 }
  0xcd   :  { %v436_v34 = vmul.f32 %v416_v9, %v711_v6  ;;  %v406_v35 = vrot.slane %v405_v48, 1  ;;  %v437_v36 = vmul.f32 %v416_v9, %v713_v7  ;;  %v438_v37 = vmul.f32 %v417_v26, %v366_v62 }
  0xce   :  { %v440_v38 = vmul.f32 %v418_v27, %v382_v33  ;;  %v398_v39 = vadd.f32 %v397_v30, %v396_v24  ;;  %v439_v40 = vmul.f32 %v417_v26, %v375_v63  ;;  %v462_v41 = vsel %vm461_vm5, %v460_v22, %v428_v13  ;;  %p569_p8 = por %p568_p7, %p567_p6 }
  0xcf   :  { %v463_v44 = vrot.slane %v432_v49, 6  ;;  %v407_v45 = vadd.f32 %v406_v35, %v405_v48  ;;  %v441_v46 = vmul.f32 %v418_v27, %v391_v4  ;;  %v466_v25 = vrot.slane %v434_v29, 5 }
  0xd0   :  { %v469_v43 = vrot.slane %v436_v34, 4  ;;  %v442_v47 = vmul.f32 %v419_v31, %v398_v39  ;;  %v475_v50 = vrot.slane %v440_v38, 2  ;;  %v482_v6 = vsel %vm461_vm5, %v481_v28, %v429_v16  ;;  %p570_p9 = pnand %p569_p8, %p563_p5 }
  0xd1   :  { %v465_v42 = vsel %vm464_vm6, %v463_v44, %v462_v41  ;;  %v443_v51 = vmul.f32 %v419_v31, %v407_v45  ;;  %v472_v52 = vrot.slane %v438_v37, 3  ;;  %v483_v53 = vrot.slane %v433_v21, 6 }
  0xd2   :  { %v468_v7 = vsel %vm467_vm7, %v466_v25, %v465_v42  ;;  %v478_v56 = vrot.slane %v442_v47, 1  ;;  %v485_v57 = vrot.slane %v435_v32, 5  ;;  %v489_v58 = vrot.slane %v439_v40, 3 }
  0xd3   :  { %v471_v55 = vsel %vm470_vm8, %v469_v43, %v468_v7  ;;  %v484_v60 = vsel %vm464_vm6, %v483_v53, %v482_v6  ;;  %v487_v61 = vrot.slane %v437_v36, 4  ;;  %v491_v62 = vrot.slane %v441_v46, 2 }
  0xd4   :  { %v474_v59 = vsel %vm473_vm9, %v472_v52, %v471_v55  ;;  %v486_v1 = vsel %vm467_vm7, %v485_v57, %v484_v60  ;;  %v493_v2 = vrot.slane %v443_v51, 1 }
  0xd5   :  { %v477_v63 = vsel %vm476_vm10, %v475_v50, %v474_v59  ;;  %v488_v5 = vsel %vm470_vm8, %v487_v61, %v486_v1 }
  0xd6   :  { %v480_v3 = vsel %vm479_vm11, %v478_v56, %v477_v63  ;;  %v490_v8 = vsel %vm473_vm9, %v489_v58, %v488_v5 }
  0xd7   :  { %497 = vst [vmem:[#allocation5] sm:$0xff] %v480_v3  ;;  %v492_v10 = vsel %vm476_vm10, %v491_v62, %v490_v8 }
  0xd8   :  { %v494_v11 = vsel %vm479_vm11, %v493_v2, %v492_v10 }
  0xd9   :  { %498 = vst.msk [vmem:[#allocation5 + $0x8] sm:$0xff] %vm286_vm1, %v494_v11 }
  0xda   :  { %573 = shalt.err (!%p570_p9)
}
  0xdb   :  { %522 = dma.vmem_to_hbm [thread:$0]  %s520_s30, 256, %s772_s4, [#allocation4]  }
  0xdc   :  { %584 = dma.done.wait [#allocation4], 256  }
  0xdd   :  { %585 = vsyncadd [#allocation4], 4294967040 }
  0xde   :  { %530 = vsyncpa [#allocation3], 1 }
  0xdf   :  { %531 = vsyncpa [#allocation4], 1 }

</bundles_post_ra>
